<compile_context>
chip_gen: v7x
topology: tpu7x:2x2x1
jax: 0.10.0
libtpu: 0.0.40
codegen_flags: <defaults>
</compile_context>

<pallas_src>
import functools

import jax
import jax.numpy as jnp
from jax.experimental import pallas as pl
from jax.experimental.pallas import tpu as pltpu


def _rpb_kernel(w_smem, out_ref, *, max_rel: int):
    """One (1, tile_q, seq_k) output tile for one head.

    w_smem : (num_buckets, num_heads) f32 in SMEM (num_buckets = 2*max_rel+1)
    out_ref: (1, tile_q, seq_k) f32 in VMEM
    """
    h = pl.program_id(0)            # head index
    qi = pl.program_id(1)           # query-row tile index
    tile_q = out_ref.shape[1]
    tile_k = out_ref.shape[2]
    num_buckets = w_smem.shape[0]

    # Relative positions for this tile (global row offset q0 = qi * tile_q;
    # the key axis is not tiled so global col == local col).
    q0 = qi * tile_q
    row = jax.lax.broadcasted_iota(jnp.int32, (tile_q, tile_k), 0) + q0   # i
    col = jax.lax.broadcasted_iota(jnp.int32, (tile_q, tile_k), 1)        # j
    bucket = jnp.clip(col - row, -max_rel, max_rel) + max_rel             # [0, 2*max_rel]

    # Gather-free embedding lookup: select chain over the (small, static)
    # bucket vocabulary using scalar weights read from SMEM.
    out = jnp.full((tile_q, tile_k), w_smem[0, h], jnp.float32)
    for b in range(1, num_buckets):                                       # static unroll
        out = jnp.where(bucket == b, w_smem[b, h], out)

    out_ref[0, :, :] = out


def _pick_tile_q(seq_q: int, seq_k: int, target_bytes: int = 4 * 1024 * 1024) -> int:
    """Largest query-row tile that is a multiple of 8, divides seq_q and keeps
    one (tile_q, seq_k) f32 tile under ~target_bytes (double-buffer friendly)."""
    if seq_q % 8 != 0:
        # Fall back to the full extent (allowed: block dim == full array dim).
        return seq_q
    max_rows = max(8, min(512, (target_bytes // (seq_k * 4)) // 8 * 8))
    tile_q = 8
    for cand in range(8, min(seq_q, max_rows) + 1, 8):
        if seq_q % cand == 0:
            tile_q = cand
    return tile_q


def relative_positional_bias(weight: jax.Array,
                             seq_len_q: int,
                             seq_len_k: int,
                             max_relative_positions: int) -> jax.Array:
    """Returns the bias with shape (num_heads, seq_len_q, seq_len_k), float32."""
    if seq_len_q != seq_len_k:
        raise NotImplementedError(
            "RelativePositionalBias currently assumes seq_len_q == seq_len_k.")
    num_buckets, num_heads = weight.shape
    assert num_buckets == 2 * max_relative_positions + 1

    tile_q = _pick_tile_q(seq_len_q, seq_len_k)
    n_q_tiles = seq_len_q // tile_q

    kernel = functools.partial(_rpb_kernel, max_rel=max_relative_positions)
    bias = pl.pallas_call(
        kernel,
        out_shape=jax.ShapeDtypeStruct((num_heads, seq_len_q, seq_len_k),
                                       jnp.float32),
        grid=(num_heads, n_q_tiles),
        in_specs=[
            # Small learnable table: whole thing in SMEM for scalar reads.
            pl.BlockSpec(memory_space=pltpu.MemorySpace.SMEM),
        ],
        out_specs=pl.BlockSpec((1, tile_q, seq_len_k),
                               lambda h, qi: (h, qi, 0)),
        compiler_params=pltpu.CompilerParams(
            dimension_semantics=("parallel", "parallel")),
    )(weight.astype(jnp.float32))

    return bias


if __name__ == "__main__":
    num_heads = 4
    max_relative_positions = 4          # -> embedding table of 9 buckets
    seq_len = 8

    # nn.Embedding(2*max+1, num_heads); the module zero-initialises the table,
    # which would make the output trivially zero — use small deterministic
    # random values instead so the lookup path is actually exercised.
    key = jax.random.PRNGKey(0)
    weight = 0.02 * jax.random.normal(
        key, (2 * max_relative_positions + 1, num_heads), dtype=jnp.float32)

    bias = relative_positional_bias(weight, seq_len, seq_len,
                                    max_relative_positions)
    bias = jax.block_until_ready(bias)

    # Pure-JAX reference (mirrors the PyTorch forward exactly).
    rng = jnp.arange(seq_len, dtype=jnp.int32)
    rel = rng[None, :] - rng[:, None]
    buckets = jnp.clip(rel, -max_relative_positions,
                       max_relative_positions) + max_relative_positions
    ref = jnp.transpose(weight[buckets], (2, 0, 1))

    assert bias.shape == (num_heads, seq_len, seq_len)
    assert bias.dtype == jnp.float32
    assert jnp.allclose(bias, ref, atol=1e-6), "mismatch vs reference"

    print("KERNEL_OK")
</pallas_src>

<mosaic_0001>
module attributes {stable_mosaic.version = 11 : i64} {
  func.func @_rpb_kernel(%arg0: i32, %arg1: i32, %arg2: memref<9x4xf32, #tpu.memory_space<smem>>, %arg3: memref<1x8x8xf32, #tpu.memory_space<vmem>>) attributes {dimension_semantics = [#tpu.dimension_semantics<parallel>, #tpu.dimension_semantics<parallel>], iteration_bounds = array<i64: 4, 1>, scalar_prefetch = 0 : i64, scratch_operands = 0 : i64, tpu.core_type = #tpu.core_type<tc>, window_params = [{transform_indices = @transform_0, window_bounds = array<i64: 9, 4>}, {transform_indices = @transform_1, window_bounds = array<i64: 1, 8, 8>}]} {
    %c8_i32 = arith.constant 8 : i32
    %0 = arith.muli %arg1, %c8_i32 : i32
    %1 = tpu.iota {dimensions = array<i32: 0>} : vector<8x8xi32>
    %2 = vector.broadcast %0 : i32 to vector<8x8xi32>
    %3 = arith.addi %1, %2 : vector<8x8xi32>
    %4 = tpu.iota {dimensions = array<i32: 1>} : vector<8x8xi32>
    %5 = arith.subi %4, %3 : vector<8x8xi32>
    %c-4_i32 = arith.constant -4 : i32
    %c4_i32 = arith.constant 4 : i32
    %6 = vector.broadcast %c-4_i32 : i32 to vector<8x8xi32>
    %7 = arith.maxsi %6, %5 : vector<8x8xi32>
    %8 = vector.broadcast %c4_i32 : i32 to vector<8x8xi32>
    %9 = arith.minsi %8, %7 : vector<8x8xi32>
    %c4_i32_0 = arith.constant 4 : i32
    %10 = vector.broadcast %c4_i32_0 : i32 to vector<8x8xi32>
    %11 = arith.addi %9, %10 : vector<8x8xi32>
    %c0 = arith.constant 0 : index
    %12 = arith.index_cast %arg0 : i32 to index
    %13 = memref.load %arg2[%c0, %12] : memref<9x4xf32, #tpu.memory_space<smem>>
    %14 = vector.broadcast %13 : f32 to vector<8x8xf32>
    %c1_i32 = arith.constant 1 : i32
    %15 = vector.broadcast %c1_i32 : i32 to vector<8x8xi32>
    %16 = arith.cmpi eq, %11, %15 : vector<8x8xi32>
    %c1 = arith.constant 1 : index
    %17 = arith.index_cast %arg0 : i32 to index
    %18 = memref.load %arg2[%c1, %17] : memref<9x4xf32, #tpu.memory_space<smem>>
    %19 = vector.broadcast %18 : f32 to vector<8x8xf32>
    %20 = arith.select %16, %19, %14 : vector<8x8xi1>, vector<8x8xf32>
    %c2_i32 = arith.constant 2 : i32
    %21 = vector.broadcast %c2_i32 : i32 to vector<8x8xi32>
    %22 = arith.cmpi eq, %11, %21 : vector<8x8xi32>
    %c2 = arith.constant 2 : index
    %23 = arith.index_cast %arg0 : i32 to index
    %24 = memref.load %arg2[%c2, %23] : memref<9x4xf32, #tpu.memory_space<smem>>
    %25 = vector.broadcast %24 : f32 to vector<8x8xf32>
    %26 = arith.select %22, %25, %20 : vector<8x8xi1>, vector<8x8xf32>
    %c3_i32 = arith.constant 3 : i32
    %27 = vector.broadcast %c3_i32 : i32 to vector<8x8xi32>
    %28 = arith.cmpi eq, %11, %27 : vector<8x8xi32>
    %c3 = arith.constant 3 : index
    %29 = arith.index_cast %arg0 : i32 to index
    %30 = memref.load %arg2[%c3, %29] : memref<9x4xf32, #tpu.memory_space<smem>>
    %31 = vector.broadcast %30 : f32 to vector<8x8xf32>
    %32 = arith.select %28, %31, %26 : vector<8x8xi1>, vector<8x8xf32>
    %c4_i32_1 = arith.constant 4 : i32
    %33 = vector.broadcast %c4_i32_1 : i32 to vector<8x8xi32>
    %34 = arith.cmpi eq, %11, %33 : vector<8x8xi32>
    %c4 = arith.constant 4 : index
    %35 = arith.index_cast %arg0 : i32 to index
    %36 = memref.load %arg2[%c4, %35] : memref<9x4xf32, #tpu.memory_space<smem>>
    %37 = vector.broadcast %36 : f32 to vector<8x8xf32>
    %38 = arith.select %34, %37, %32 : vector<8x8xi1>, vector<8x8xf32>
    %c5_i32 = arith.constant 5 : i32
    %39 = vector.broadcast %c5_i32 : i32 to vector<8x8xi32>
    %40 = arith.cmpi eq, %11, %39 : vector<8x8xi32>
    %c5 = arith.constant 5 : index
    %41 = arith.index_cast %arg0 : i32 to index
    %42 = memref.load %arg2[%c5, %41] : memref<9x4xf32, #tpu.memory_space<smem>>
    %43 = vector.broadcast %42 : f32 to vector<8x8xf32>
    %44 = arith.select %40, %43, %38 : vector<8x8xi1>, vector<8x8xf32>
    %c6_i32 = arith.constant 6 : i32
    %45 = vector.broadcast %c6_i32 : i32 to vector<8x8xi32>
    %46 = arith.cmpi eq, %11, %45 : vector<8x8xi32>
    %c6 = arith.constant 6 : index
    %47 = arith.index_cast %arg0 : i32 to index
    %48 = memref.load %arg2[%c6, %47] : memref<9x4xf32, #tpu.memory_space<smem>>
    %49 = vector.broadcast %48 : f32 to vector<8x8xf32>
    %50 = arith.select %46, %49, %44 : vector<8x8xi1>, vector<8x8xf32>
    %c7_i32 = arith.constant 7 : i32
    %51 = vector.broadcast %c7_i32 : i32 to vector<8x8xi32>
    %52 = arith.cmpi eq, %11, %51 : vector<8x8xi32>
    %c7 = arith.constant 7 : index
    %53 = arith.index_cast %arg0 : i32 to index
    %54 = memref.load %arg2[%c7, %53] : memref<9x4xf32, #tpu.memory_space<smem>>
    %55 = vector.broadcast %54 : f32 to vector<8x8xf32>
    %56 = arith.select %52, %55, %50 : vector<8x8xi1>, vector<8x8xf32>
    %c8_i32_2 = arith.constant 8 : i32
    %57 = vector.broadcast %c8_i32_2 : i32 to vector<8x8xi32>
    %58 = arith.cmpi eq, %11, %57 : vector<8x8xi32>
    %c8 = arith.constant 8 : index
    %59 = arith.index_cast %arg0 : i32 to index
    %60 = memref.load %arg2[%c8, %59] : memref<9x4xf32, #tpu.memory_space<smem>>
    %61 = vector.broadcast %60 : f32 to vector<8x8xf32>
    %62 = arith.select %58, %61, %56 : vector<8x8xi1>, vector<8x8xf32>
    %c0_3 = arith.constant 0 : index
    %c0_4 = arith.constant 0 : index
    %c0_5 = arith.constant 0 : index
    %63 = vector.load %arg3[%c0_3, %c0_4, %c0_5] : memref<1x8x8xf32, #tpu.memory_space<vmem>>, vector<1x8x8xf32>
    %64 = vector.shape_cast %63 : vector<1x8x8xf32> to vector<8x8xf32>
    %65 = vector.shape_cast %62 : vector<8x8xf32> to vector<1x8x8xf32>
    tpu.vector_store %arg3[%c0_3, %c0_4, %c0_5], %65 {strides = array<i32>} : memref<1x8x8xf32, #tpu.memory_space<vmem>>, vector<1x8x8xf32>,
    return
  }
  func.func @transform_0(%arg0: i32, %arg1: i32) -> (i32, i32) {
    %c0_i32 = arith.constant 0 : i32
    %c0_i32_0 = arith.constant 0 : i32
    %c0_i32_1 = arith.constant 0 : i32
    return %c0_i32, %c0_i32_0 : i32, i32
  }
  func.func @transform_1(%arg0: i32, %arg1: i32) -> (i32, i32, i32) {
    %c0_i32 = arith.constant 0 : i32
    %c0_i32_0 = arith.constant 0 : i32
    return %arg0, %arg1, %c0_i32 : i32, i32, i32
  }
}

</mosaic_0001>

<bundles_post_ra>
// kernel: tpu_custom_call.1
= control target key start
LH: loop header
LB: loop body
LE: loop exit
PB: predicated region body
PF: predicated region fallthrough
CT: control target
= control target key end

     0   :  { %6 = vsyncpa [#allocation4], 0  ;;  %s670_s0 = inlined_call_operand.vmem [shape: f32[9,4], index: 0, kind: input, shape index: {}]   ;;  %s671_s1 = inlined_call_operand.hbm [shape: f32[4,8,8], index: 1, kind: output, shape index: {}]  }
   0x1   :  { %7 = vsyncpa [#allocation3], 0 }
   0x2   :  { %9 = vsyncpa [#allocation3 + $0x1], 0  ;;  %s501_s6 = smov 0   ;;  %s503_s7 = smov 0  }
   0x3   :  { %s505_s8 = smov 0   ;;  %s507_s9 = smov 0  }
   0x4   :  { %s509_s10 = smov 0   ;;  %s511_s11 = smov 0  }
   0x5 LB: > { %s285_s12 = sadd.s32 4294967295, %s485_s11   ;;  %s286_s13 = sadd.s32 4294967294, %s485_s11   ;;  %s485_s11 = sphi %s511_s11, %s15_s11   ;;  %s481_s10 = sphi %s509_s10, %s681_s10   ;;  %s477_s9 = sphi %s507_s9, %s680_s9   ;;  %s473_s8 = sphi %s505_s8, %s679_s8   ;;  %s469_s7 = sphi %s503_s7, %s678_s7   ;;  %s465_s6 = sphi %s501_s6, %s677_s6  }
   0x6   : > { %s27_s14 = sadd.s32 1, %s481_s10  ;;  %s57_s15 = sadd.s32 1, %s473_s8 }
   0x7   : > { %p29_p0 = scmp.ge.s32.totalorder %s27_s14, 4  ;;  %p67_p1 = scmp.ne.s32.totalorder %s473_s8, %s469_s7 }
   0x8   : > { %p68_p2 = scmp.eq.s32.totalorder %s285_s12, 3  ;;  %p73_p3 = scmp.ne.s32.totalorder %s469_s7, %s465_s6 }
   0x9   : > { %s683_s14 = smov (%p29_p0, %s27_s14), 0  ;;  %p74_p5 = scmp.eq.s32.totalorder %s286_s13, 3 }
   0xa   : > { %p541_p4 = por %p68_p2, %p67_p1  ;;  %s52_s17 = ssub.s32 %s481_s10, %s683_s14 }
   0xb   : > { %p287_p6 = scmp.ge.s32.totalorder %s485_s11, 1  ;;  %p55_p7 = scmp.eq.s32.totalorder %s52_s17, 0 }
   0xc   : > { %p548_p8 = por %p74_p5, %p73_p3  ;;  %p81_p9 = scmp.lt.s32.totalorder %s485_s11, 5 }
   0xd   : > { %s554_s19 = scalar_select %p55_p7, %s473_s8, %s57_s15  }
   0xe   : > { %p556_p10 = pnand %p287_p6, %p81_p9  ;;  %p560_p11 = scmp.eq.s32.totalorder %s285_s12, 0 }
   0xf   : > { %s93_s24 = sshll.u32 %s670_s0, 4  ;;  %s94_s24 = int_to_ptr.vmem [resolvable:$true] %s93_s24 }
  0x10   : > { %p326_p12 = pneg %p556_p10  ;;  %s388_s26 = scalar_lea.vmem %s94_s24, 256 }
  0x11   : > { %p389_p0 = scmp.ne.s32.totalorder %s94_s24, %s388_s26  ;;  %p396_p5 = scmp.lt.s32.totalorder %s94_s24, %s94_s24 }
  0x12   : > { %p571_p13 = pnand %p560_p11, %p326_p12  ;;  %p397_p6 = scmp.lt.s32.totalorder %s388_s26, %s388_s26 }
  0x14   : > { %p390_p1 = pneg %p571_p13  ;;  %p398_p7 = por %p397_p6, %p396_p5 }
  0x16   : > { %p391_p2 = pnand %p390_p1, %p389_p0 }
  0x18   : > { %p392_p3 = pneg %p391_p2 }
  0x1a   : > { %p399_p9 = pnand %p398_p7, %p392_p3 }
  0x1c   : > { %402 = shalt.err (!%p399_p9)
}
  0x1d   : > { %s487_s27 = smov [#allocation2]   ;;  %s488_s28 = smov 128  }
  0x1e   : > { %s489_s29 = smov 8   ;;  %109 = sbr.rel (%p556_p10) target bundleno = 80 (0x50), region = 24 }
  0x1f   : > { %329 = dma.vmem_to_smem (!%p571_p13), %s94_s24, 256, %s487_s27, [#allocation4], %s488_s28, %s488_s28, %s489_s29  }
  0x25   : > { %456 = dma.done.wait (%p560_p11), [#allocation4], 256  }
  0x26   : > { %458 = vsyncadd (%p560_p11), [#allocation4], 4294967040 }
  0x27   : > { %115 = sfence }
  0x28   : > { %s122_s30 = sand.u32 1, %s469_s7   ;;  %v126_v0 = vlaneseq  ;;  %s587_s2 = sld [smem:[#allocation2 + %s477_s9]]  ;;  %vm200_vm10 = vcmask 64512  }
  0x29   : > { %s591_s3 = sshll.u32 %s122_s30, 3  ;;  %s141_s4 = sshra.s32 %s477_s9, 7 }
  0x2a   : > { %v127_v1 = vshrl.u32 %v126_v0, 7  ;;  %v131_v2 = vand.u32 127, %v126_v0  ;;  %s594_s5 = sshll.u32 %s141_s4, 7  ;;  %s598_s13 = sand.u32 127, %s477_s9 }
  0x2b   : > { %s305_s12 = sadd.s32 128, %s594_s5  ;;  %s307_s17 = sadd.s32 256, %s594_s5 }
  0x2c   : > { %v132_v3 = vsub.s32 %v131_v2, %v127_v1  ;;  %s147_s15 = sadd.s32 %s305_s12, %s598_s13  ;;  %s154_s21 = sadd.s32 %s307_s17, %s598_s13 }
  0x2d   : > { %s148_s20 = sld [smem:[#allocation2 + %s147_s15]]  ;;  %s309_s23 = sadd.s32 384, %s594_s5 }
  0x2e   : > { %vm133_vm0 = vcmp.gt.s32.totalorder %v132_v3, 4294967292  ;;  %s155_s22 = sld [smem:[#allocation2 + %s154_s21]]  ;;  %s161_s24 = sadd.s32 %s309_s23, %s598_s13  ;;  %v139_v7 = vstv %s587_s2 }
  0x2f   : > { %v134_v4 = vsel %vm133_vm0, %v132_v3, 4294967292  ;;  %s311_s25 = sadd.s32 512, %s594_s5  ;;  %s162_s26 = sld [smem:[#allocation2 + %s161_s24]] }
  0x30   : > { %vm135_vm1 = vcmp.lt.s32.totalorder %v134_v4, 4  ;;  %s168_s27 = sadd.s32 %s311_s25, %s598_s13  ;;  %s313_s29 = sadd.s32 640, %s594_s5 }
  0x31   : > { %v136_v5 = vsel %vm135_vm1, %v134_v4, 4  ;;  %s169_s28 = sld [smem:[#allocation2 + %s168_s27]]  ;;  %s175_s4 = sadd.s32 %s313_s29, %s598_s13 }
  0x32   : > { %v137_v6 = vadd.s32 4, %v136_v5  ;;  %s315_s12 = sadd.s32 768, %s594_s5  ;;  %s176_s15 = sld [smem:[#allocation2 + %s175_s4]] }
  0x33   : > { %v149_v8 = vstv %s148_s20  ;;  %s182_s17 = sadd.s32 %s315_s12, %s598_s13  ;;  %s317_s23 = sadd.s32 896, %s594_s5 }
  0x34   : > { %vm140_vm2 = vcmp.eq.s32.totalorder %v137_v6, 1  ;;  %vm151_vm3 = vcmp.eq.s32.totalorder %v137_v6, 2  ;;  %v156_v9 = vstv %s155_s22  ;;  %vm158_vm4 = vcmp.eq.s32.totalorder %v137_v6, 3  ;;  %s183_s21 = sld [smem:[#allocation2 + %s182_s17]]  ;;  %s189_s24 = sadd.s32 %s317_s23, %s598_s13 }
  0x35   : > { %v150_v10 = vsel %vm140_vm2, %v149_v8, %v139_v7  ;;  %vm165_vm5 = vcmp.eq.s32.totalorder %v137_v6, 4  ;;  %s319_s25 = sadd.s32 1024, %s594_s5  ;;  %v163_v12 = vstv %s162_s26  ;;  %s190_s2 = sld [smem:[#allocation2 + %s189_s24]]  ;;  %vm172_vm6 = vcmp.eq.s32.totalorder %v137_v6, 5 }
  0x36   : > { %v157_v11 = vsel %vm151_vm3, %v156_v9, %v150_v10  ;;  %s196_s27 = sadd.s32 %s319_s25, %s598_s13  ;;  %vm179_vm7 = vcmp.eq.s32.totalorder %v137_v6, 6  ;;  %s124_s22 = scalar_lea.vmem [#allocation5], %s591_s3  ;;  %vm186_vm8 = vcmp.eq.s32.totalorder %v137_v6, 7  ;;  %vm193_vm9 = vcmp.eq.s32.totalorder %v137_v6, 8 }
  0x37   : > { %v164_v13 = vsel %vm158_vm4, %v163_v12, %v157_v11  ;;  %v170_v14 = vstv %s169_s28  ;;  %s197_s20 = sld [smem:[#allocation2 + %s196_s27]]  ;;  %s217_s29 = sshll.u32 %s124_s22, 4  ;;  %s618_s29 = int_to_ptr.vmem [resolvable:$true] %s217_s29 }
  0x38   : > { %v171_v15 = vsel %vm165_vm5, %v170_v14, %v164_v13  ;;  %v177_v16 = vstv %s176_s15  ;;  %s301_s5 = sshll.u32 %s477_s9, 7  ;;  %s203_s9 = scalar_lea.sflag [#allocation3], %s122_s30 }
  0x39   : > { %v178_v17 = vsel %vm172_vm6, %v177_v16, %v171_v15  ;;  %s623_s26 = scalar_lea.hbm %s671_s1, %s301_s5  ;;  %s403_s28 = scalar_lea.vmem %s618_s29, 128 }
  0x3a   : > { %v184_v18 = vstv %s183_s21  ;;  %p404_p10 = scmp.ne.s32.totalorder %s618_s29, %s403_s28  ;;  %s490_s4 = smov [#allocation5]  }
  0x3b   : > { %v185_v19 = vsel %vm179_vm7, %v184_v18, %v178_v17  ;;  %v191_v20 = vstv %s190_s2  ;;  %s407_s12 = sshll.u32 %s490_s4, 4  ;;  %s408_s12 = int_to_ptr.vmem [resolvable:$false] %s407_s12 }
  0x3c   : > { %v192_v21 = vsel %vm186_vm8, %v191_v20, %v185_v19  ;;  %p405_p11 = pnand %p404_p10, %p541_p4  ;;  %s409_s15 = scalar_lea.vmem %s408_s12, 256 }
  0x3d   : > { %v198_v22 = vstv %s197_s20  ;;  %p410_p13 = scmp.lt.s32.totalorder %s618_s29, %s408_s12  ;;  %p411_p0 = scmp.lt.s32.totalorder %s409_s15, %s403_s28 }
  0x3e   : > { %v199_v23 = vsel %vm193_vm9, %v198_v22, %v192_v21  ;;  %p406_p12 = pneg %p405_p11 }
  0x3f   : > { %201 = vst.msk [vmem:[%s124_s22] sm:$0xff] %vm200_vm10, %v199_v23  ;;  %p412_p1 = por %p411_p0, %p410_p13 }
  0x41   : > { %p413_p2 = pnand %p412_p1, %p406_p12 }
  0x43   : > { %416 = shalt.err (!%p413_p2)
}
  0x44   : > { %s417_s30 = scalar_lea.hbm %s623_s26, 128  ;;  %s421_s23 = scalar_lea.hbm %s671_s1, 512 }
  0x45   : > { %p418_p3 = scmp.ne.s32.totalorder %s623_s26, %s417_s30  ;;  %p422_p7 = scmp.lt.u32.totalorder %s623_s26, %s671_s1 }
  0x46   : > { %p423_p9 = scmp.lt.u32.totalorder %s421_s23, %s417_s30  ;;  %p425_p11 = scmp.lt.u32.totalorder %s417_s30, %s623_s26 }
  0x47   : > { %p419_p5 = pnand %p418_p3, %p541_p4 }
  0x48   : > { %p424_p10 = por %p423_p9, %p422_p7 }
  0x49   : > { %p420_p6 = pneg %p419_p5 }
  0x4a   : > { %p426_p12 = por %p425_p11, %p424_p10 }
  0x4c   : > { %p427_p13 = pnand %p426_p12, %p420_p6 }
  0x4e   : > { %430 = shalt.err (!%p427_p13)
}
  0x4f   : > { %324 = dma.vmem_to_hbm [thread:$0]  (%p541_p4), %s618_s29, 128, %s623_s26, %s203_s9  }
  0x50 PF: > { %p336_p0 = scmp.ge.s32.totalorder %s485_s11, 2  ;;  %s229_s2 = sand.u32 1, %s465_s6  }
  0x51   : > { %s230_s27 = scalar_lea.sflag [#allocation3], %s229_s2 }
  0x52   : > { %p331_p1 = pnand %p336_p0, %p548_p8 }
  0x54   : > { %460 = dma.done.wait (!%p331_p1), %s230_s27, 128  }
  0x55   : > { %462 = vsyncadd (!%p331_p1), %s230_s27, 4294967168  ;;  %s15_s11 = sadd.s32 1, %s485_s11   ;;  %s677_s6 = smov %s469_s7 }
  0x56   : > { %p12_p2 = scmp.ge.s32.totalorder %s15_s11, 6   ;;  %s678_s7 = smov %s473_s8 }
  0x57   : > { %s679_s8 = smov %s554_s19  ;;  %s680_s9 = smov %s481_s10 }
  0x58   : > { %s681_s10 = smov %s683_s14  ;;  %14 = sbr.rel (!%p12_p2) target bundleno = 5 (0x5), region = 61 }
  0x5f   :  { %235 = vsyncpa [#allocation3], 1 }
  0x60   :  { %237 = vsyncpa [#allocation3 + $0x1], 1 }
  0x61   :  { %238 = vsyncpa [#allocation4], 1 }
  0x62   :  { %240 = vsyncpa [#allocation4 + $0x1], 1 }

</bundles_post_ra>
